<compile_context>
chip_gen: v6e
topology: v6e:2x2x1
jax: 0.10.0
libtpu: 0.0.40
codegen_flags: <defaults>
</compile_context>

<pallas_src>
import functools

import jax
import jax.numpy as jnp
from jax.experimental import pallas as pl
from jax.experimental.pallas import tpu as pltpu


# ----------------------------- kernels ------------------------------------

def _dispersion_kernel_sd(b1_ref, pi_ref, row_bias_ref, feat_bias_ref, out_ref):
    # b1_ref:        SMEM (1,)        scalar b1
    # pi_ref:        (tn, tf)         tile of pi (any float dtype; cast here)
    # row_bias_ref:  (tn, 1)          b0 + b2*log_R + Z@beta
    # feat_bias_ref: (1, tf)          0.5*softplus(kappa)^2
    # out_ref:       (tn, tf)         log_phi_mean tile
    b1 = b1_ref[0]
    out_ref[...] = (b1 * jnp.log(pi_ref[...].astype(jnp.float32))
                    + row_bias_ref[...] + feat_bias_ref[...]).astype(out_ref.dtype)


def _dispersion_kernel_nosd(b1_ref, pi_ref, row_bias_ref, out_ref):
    b1 = b1_ref[0]
    out_ref[...] = (b1 * jnp.log(pi_ref[...].astype(jnp.float32))
                    + row_bias_ref[...]).astype(out_ref.dtype)


# --------------------------- tile selection --------------------------------

def _round_up(x, m):
    return ((x + m - 1) // m) * m


def _select_tiles(N, F, vmem_capacity_bytes):
    """Generation-aware (tn, tf, vmem_cap). tn is a multiple of 8 (or == N),
    tf a multiple of 128 (or == F)."""
    if vmem_capacity_bytes is not None and vmem_capacity_bytes > (96 << 20):
        # v5e / v6e: 128 MiB physical VMEM -> big blocks, long HBM bursts.
        block_budget = 16 << 20
        vmem_cap = 96 << 20
    else:
        # v7x (64 MiB per TC) or unknown hardware: stay conservative.
        block_budget = 4 << 20
        vmem_cap = 40 << 20

    budget_elems = block_budget // 4  # f32 elements per block

    # Prefer full rows: each (tn, F) block is one fully contiguous HBM region.
    if 4 * 8 * F <= block_budget:
        tf = F
    else:
        tf = max(128, min(((block_budget // (4 * 8)) // 128) * 128, 8192))

    max_tn = max(8, ((budget_elems // max(tf, 1)) // 8) * 8)
    tn = N if N <= max_tn else max_tn

    # Keep >= 2 grid blocks so "parallel" axes can shard across v7x's 2 TCs.
    if pl.cdiv(N, tn) == 1 and pl.cdiv(F, tf) == 1:
        if N >= 16:
            tn = max(8, _round_up((N + 1) // 2, 8))
        elif F >= 256:
            tf = max(128, _round_up(pl.cdiv(F, 2), 128))

    return tn, tf, vmem_cap


# ------------------------------ wrapper ------------------------------------

def dispersion_forward(pi, log_R, Z, beta, b, kappa, *, estimate_sd=True,
                       out_dtype=jnp.float32):
    """Pallas implementation of DispersionModel.forward.

    pi:    (N, F) float, strictly positive
    log_R: (N,)   float
    Z:     (N, C) float or None
    beta:  (C,)   float or None
    b:     (3,)   float -> b0, b1, b2
    kappa: (F,)   float (required when estimate_sd=True)
    """
    N, F = pi.shape
    if estimate_sd and kappa is None:
        raise ValueError("estimate_sd=True requires kappa (matches reference).")

    if pi.dtype == jnp.float64:
        pi = pi.astype(jnp.float32)  # TPU Pallas has no f64 path
    log_R = log_R.astype(jnp.float32)
    b = b.astype(jnp.float32)

    # ---- hoist row-constant / feature-constant terms (tiny XLA ops) -------
    row_bias = b[0] + b[2] * log_R.reshape(N, 1)                       # (N, 1)
    if Z is not None and beta is not None:
        row_bias = row_bias + Z.astype(jnp.float32) @ beta.astype(
            jnp.float32).reshape(-1, 1)
    row_bias = row_bias.astype(jnp.float32)

    use_sd = bool(estimate_sd)
    if use_sd:
        sd = jax.nn.softplus(kappa.astype(jnp.float32))
        feat_bias = (0.5 * sd * sd).reshape(1, F).astype(jnp.float32)  # (1, F)

    b1 = b[1].reshape(1)                                               # SMEM scalar

    # ---- tiling ------------------------------------------------------------
    try:
        vmem_capacity = pltpu.get_tpu_info().vmem_capacity_bytes
    except Exception:
        vmem_capacity = None
    tn, tf, vmem_cap = _select_tiles(N, F, vmem_capacity)
    grid = (pl.cdiv(N, tn), pl.cdiv(F, tf))

    pi_bytes = pi.dtype.itemsize
    out_bytes = jnp.dtype(out_dtype).itemsize
    block_bytes = (pi_bytes + out_bytes) * tn * tf
    vmem_need = 2 * block_bytes + 2 * 4 * (tn + tf) + (2 << 20)
    vmem_limit = int(min(max(vmem_need, 32 << 20), vmem_cap))

    cost = pl.CostEstimate(
        flops=3 * N * F,
        transcendentals=N * F,
        bytes_accessed=(pi_bytes + out_bytes) * N * F + 4 * (N + F) + 12,
    )

    in_specs = [
        pl.BlockSpec(memory_space=pltpu.MemorySpace.SMEM),     # b1 (1,)
        pl.BlockSpec((tn, tf), lambda i, j: (i, j)),           # pi
        pl.BlockSpec((tn, 1), lambda i, j: (i, 0)),            # row_bias
    ]
    operands = [b1, pi, row_bias]
    if use_sd:
        in_specs.append(pl.BlockSpec((1, tf), lambda i, j: (0, j)))  # feat_bias
        operands.append(feat_bias)
        kernel = _dispersion_kernel_sd
    else:
        kernel = _dispersion_kernel_nosd

    return pl.pallas_call(
        kernel,
        out_shape=jax.ShapeDtypeStruct((N, F), out_dtype),
        grid_spec=pltpu.PrefetchScalarGridSpec(
            num_scalar_prefetch=0,
            grid=grid,
            in_specs=in_specs,
            out_specs=pl.BlockSpec((tn, tf), lambda i, j: (i, j)),
        ),
        compiler_params=pltpu.CompilerParams(
            dimension_semantics=("parallel", "parallel"),
            vmem_limit_bytes=vmem_limit),
        cost_estimate=cost,
    )(*operands)


# ------------------------------ reference ----------------------------------

def dispersion_forward_ref(pi, log_R, Z, beta, b, kappa, estimate_sd=True):
    """Plain-JAX reference matching the PyTorch forward semantics."""
    b0, b1, b2 = b[0], b[1], b[2]
    val1 = b1 * jnp.log(pi)
    val2 = b2 * log_R[:, None]
    val3 = (Z @ beta[:, None]) if Z is not None else 0.0
    out = b0 + val1 + val2 + val3
    if estimate_sd:
        sd = jax.nn.softplus(kappa)
        out = out + 0.5 * sd * sd
    return out


# TODO(synk): log_prior / log_density / log_posterior of the module are host-side
# scalar reductions outside forward(); not implemented as Pallas kernels.

if __name__ == "__main__":
    # Deterministic synthetic setup consistent with DispersionModel.__init__
    N = 8      # sample_count
    F = 256    # feature_count
    C = 4      # covariate_count

    key = jax.random.PRNGKey(0)
    k_y, k_z, k_b, k_beta, k_kappa, k_pi = jax.random.split(key, 6)

    # Y: positive counts -> R = Y.sum(1) > 0
    Y = jax.random.randint(k_y, (N, F), minval=1, maxval=50).astype(jnp.float32)
    R = Y.sum(axis=1)
    log_R = jnp.log(R)

    Z = jax.random.normal(k_z, (N, C), dtype=jnp.float32)
    b = 0.05 * jax.random.normal(k_b, (3,), dtype=jnp.float32)     # b0, b1, b2
    beta = jax.random.normal(k_beta, (C,), dtype=jnp.float32)
    kappa = jax.random.normal(k_kappa, (F,), dtype=jnp.float32)    # estimate_sd

    # pi: strictly positive proportions (log(pi) assumes pi > 0, as in the ref)
    pi = jax.random.uniform(k_pi, (N, F), minval=1e-3, maxval=1.0,
                            dtype=jnp.float32)

    out = dispersion_forward(pi, log_R, Z, beta, b, kappa, estimate_sd=True)
    out = jax.block_until_ready(out)
    ref = dispersion_forward_ref(pi, log_R, Z, beta, b, kappa, estimate_sd=True)
    assert out.shape == (N, F)
    assert jnp.allclose(out, ref, atol=1e-5, rtol=1e-5), "mismatch vs reference"

    # No-covariate / no-sd path (specialized kernel without feat_bias input).
    out2 = dispersion_forward(pi, log_R, None, None, b, None, estimate_sd=False)
    out2 = jax.block_until_ready(out2)
    ref2 = dispersion_forward_ref(pi, log_R, None, None, b, None,
                                  estimate_sd=False)
    assert jnp.allclose(out2, ref2, atol=1e-5, rtol=1e-5), "mismatch (no Z/sd)"

    # Non-divisible shape to exercise cdiv edge blocks (masked edge stores).
    N3, F3 = 24, 384
    pi3 = jax.random.uniform(jax.random.PRNGKey(1), (N3, F3), minval=1e-3,
                             maxval=1.0, dtype=jnp.float32)
    lr3 = jnp.log(jnp.arange(1, N3 + 1, dtype=jnp.float32) * 100.0)
    kp3 = jax.random.normal(jax.random.PRNGKey(2), (F3,), dtype=jnp.float32)
    out3 = dispersion_forward(pi3, lr3, None, None, b, kp3, estimate_sd=True)
    out3 = jax.block_until_ready(out3)
    ref3 = dispersion_forward_ref(pi3, lr3, None, None, b, kp3, estimate_sd=True)
    assert jnp.allclose(out3, ref3, atol=1e-5, rtol=1e-5), "mismatch (edge blocks)"

    print("KERNEL_OK")
</pallas_src>

<mosaic_0001>
module attributes {stable_mosaic.version = 11 : i64} {
  func.func @_dispersion_kernel_sd(%arg0: i32, %arg1: i32, %arg2: memref<1xf32, #tpu.memory_space<smem>>, %arg3: memref<8x128xf32, #tpu.memory_space<vmem>>, %arg4: memref<8x1xf32, #tpu.memory_space<vmem>>, %arg5: memref<1x128xf32, #tpu.memory_space<vmem>>, %arg6: memref<8x128xf32, #tpu.memory_space<vmem>>) attributes {dimension_semantics = [#tpu.dimension_semantics<parallel>, #tpu.dimension_semantics<parallel>], iteration_bounds = array<i64: 1, 2>, scalar_prefetch = 0 : i64, scratch_operands = 0 : i64, tpu.core_type = #tpu.core_type<tc>, window_params = [{transform_indices = @transform_0, window_bounds = array<i64: 1>}, {transform_indices = @transform_1, window_bounds = array<i64: 8, 128>}, {transform_indices = @transform_2, window_bounds = array<i64: 8, 1>}, {transform_indices = @transform_3, window_bounds = array<i64: 1, 128>}, {transform_indices = @transform_4, window_bounds = array<i64: 8, 128>}]} {
    %c0 = arith.constant 0 : index
    %0 = memref.load %arg2[%c0] : memref<1xf32, #tpu.memory_space<smem>>
    %c0_0 = arith.constant 0 : index
    %c0_1 = arith.constant 0 : index
    %1 = vector.load %arg3[%c0_0, %c0_1] : memref<8x128xf32, #tpu.memory_space<vmem>>, vector<8x128xf32>
    %2 = math.log %1 : vector<8x128xf32>
    %3 = vector.broadcast %0 : f32 to vector<8x128xf32>
    %4 = arith.mulf %3, %2 : vector<8x128xf32>
    %c0_2 = arith.constant 0 : index
    %c0_3 = arith.constant 0 : index
    %5 = vector.load %arg4[%c0_2, %c0_3] : memref<8x1xf32, #tpu.memory_space<vmem>>, vector<8x1xf32>
    %6 = vector.broadcast %5 : vector<8x1xf32> to vector<8x128xf32>
    %7 = arith.addf %4, %6 : vector<8x128xf32>
    %c0_4 = arith.constant 0 : index
    %c0_5 = arith.constant 0 : index
    %8 = vector.load %arg5[%c0_4, %c0_5] : memref<1x128xf32, #tpu.memory_space<vmem>>, vector<1x128xf32>
    %9 = vector.broadcast %8 : vector<1x128xf32> to vector<8x128xf32>
    %10 = arith.addf %7, %9 : vector<8x128xf32>
    %c0_6 = arith.constant 0 : index
    %c0_7 = arith.constant 0 : index
    %11 = vector.load %arg6[%c0_6, %c0_7] : memref<8x128xf32, #tpu.memory_space<vmem>>, vector<8x128xf32>
    tpu.vector_store %arg6[%c0_6, %c0_7], %10 {strides = array<i32>} : memref<8x128xf32, #tpu.memory_space<vmem>>, vector<8x128xf32>,
    return
  }
  func.func @transform_0(%arg0: i32, %arg1: i32) -> i32 {
    %c0_i32 = arith.constant 0 : i32
    %c0_i32_0 = arith.constant 0 : i32
    return %c0_i32 : i32
  }
  func.func @transform_1(%arg0: i32, %arg1: i32) -> (i32, i32) {
    %c0_i32 = arith.constant 0 : i32
    return %arg0, %arg1 : i32, i32
  }
  func.func @transform_2(%arg0: i32, %arg1: i32) -> (i32, i32) {
    %c0_i32 = arith.constant 0 : i32
    %c0_i32_0 = arith.constant 0 : i32
    return %arg0, %c0_i32 : i32, i32
  }
  func.func @transform_3(%arg0: i32, %arg1: i32) -> (i32, i32) {
    %c0_i32 = arith.constant 0 : i32
    %c0_i32_0 = arith.constant 0 : i32
    return %c0_i32, %arg1 : i32, i32
  }
  func.func @transform_4(%arg0: i32, %arg1: i32) -> (i32, i32) {
    %c0_i32 = arith.constant 0 : i32
    return %arg0, %arg1 : i32, i32
  }
}

</mosaic_0001>

<bundles_post_ra>
// kernel: tpu_custom_call.1
= control target key start
LH: loop header
LB: loop body
LE: loop exit
PB: predicated region body
PF: predicated region fallthrough
CT: control target
= control target key end

     0   :  { %s771_s0 = inlined_call_operand.<no memory space> [shape: f32[1], index: 0, kind: input, shape index: {}]   ;;  %s772_s1 = inlined_call_operand.hbm [shape: f32[8,256], index: 1, kind: input, shape index: {}]   ;;  %s773_s2 = inlined_call_operand.vmem [shape: f32[8,1], index: 2, kind: input, shape index: {}]   ;;  %s774_s3 = inlined_call_operand.vmem [shape: f32[1,256], index: 3, kind: input, shape index: {}]   ;;  %s775_s4 = inlined_call_operand.hbm [shape: f32[8,256], index: 4, kind: output, shape index: {}]  }
   0x1   :  { %9 = sst [smem:[#allocation2]] %s771_s0 }
   0x2   :  { %10 = vsyncpa [#allocation4], 0 }
   0x3   :  { %12 = vsyncpa [#allocation4 + $0x1], 0 }
   0x4   :  { %13 = vsyncpa [#allocation5], 0 }
   0x5   :  { %15 = vsyncpa [#allocation5 + $0x1], 0  ;;  %s629_s17 = smov 0   ;;  %s631_s18 = smov 0  }
   0x6   :  { %s633_s19 = smov 0   ;;  %s635_s20 = smov 0  }
   0x7   :  { %s637_s21 = smov 0   ;;  %s639_s22 = smov 0  }
   0x8 LB: > { %s407_s0 = sadd.s32 4294967295, %s596_s22   ;;  %s408_s23 = sadd.s32 4294967294, %s596_s22   ;;  %s596_s22 = sphi %s639_s22, %s21_s22   ;;  %s592_s21 = sphi %s637_s21, %s787_s21   ;;  %s588_s20 = sphi %s635_s20, %s786_s20   ;;  %s584_s19 = sphi %s633_s19, %s785_s19   ;;  %s580_s18 = sphi %s631_s18, %s784_s18   ;;  %s576_s17 = sphi %s629_s17, %s783_s17  }
   0x9   : > { %s30_s24 = sadd.s32 1, %s592_s21  ;;  %s63_s25 = sadd.s32 1, %s584_s19 }
   0xa   : > { %p31_p0 = scmp.ge.s32.totalorder %s30_s24, 2  ;;  %p70_p1 = scmp.ne.s32.totalorder %s584_s19, %s580_s18 }
   0xb   : > { %p71_p2 = scmp.eq.s32.totalorder %s596_s22, 0  ;;  %p76_p3 = scmp.ne.s32.totalorder %s580_s18, %s576_s17 }
   0xc   : > { %s789_s24 = smov (%p31_p0, %s30_s24), 0  ;;  %p77_p5 = scmp.eq.s32.totalorder %s407_s0, 0 }
   0xd   : > { %p670_p4 = por %p71_p2, %p70_p1  ;;  %s59_s27 = ssub.s32 %s592_s21, %s789_s24 }
   0xe   : > { %p154_p6 = scmp.eq.s32.totalorder %s407_s0, 1  ;;  %p61_p7 = scmp.eq.s32.totalorder %s59_s27, 0 }
   0xf   : > { %p676_p8 = por %p77_p5, %p76_p3  ;;  %p160_p10 = scmp.eq.s32.totalorder %s408_s23, 1 }
  0x10   : > { %p680_p9 = por %p154_p6, %p70_p1  ;;  %p434_p13 = scmp.lt.s32.totalorder %s596_s22, 2 }
  0x11   : > { %s685_s30 = scalar_select %p61_p7, %s584_s19, %s63_s25  }
  0x12   : > { %p687_p11 = por %p160_p10, %p76_p3  ;;  %s190_s6 = sand.u32 1, %s584_s19  }
  0x13   : > { %s412_s7 = sshll.u32 %s190_s6, 3  ;;  %s413_s8 = sshll.u32 %s592_s21, 7 }
  0x14   : > { %s779_s5 = scalar_select %p687_p11, 1, 0 }
  0x15   : > { %s201_s11 = scalar_lea.hbm %s772_s1, %s413_s8  ;;  %s194_s12 = scalar_lea.vmem [#allocation3], %s412_s7 }
  0x16   : > { %s203_s13 = sshll.u32 %s194_s12, 4  ;;  %p700_p0 = pnand %p434_p13, %p670_p4  ;;  %s204_s13 = int_to_ptr.vmem [resolvable:$true] %s203_s13 }
  0x17   : > { %p414_p1 = scmp.ge.s32.totalorder %s596_s22, 1  ;;  %p214_p2 = scmp.lt.s32.totalorder %s596_s22, 3 }
  0x18   : > { %s191_s15 = scalar_lea.sflag [#allocation4], %s190_s6  ;;  %p490_p3 = pneg %p700_p0 }
  0x19   : > { %s501_s16 = scalar_lea.vmem %s204_s13, 128  ;;  %s598_s0 = smov [#allocation3]  }
  0x1a   : > { %p502_p5 = scmp.ne.s32.totalorder %s204_s13, %s501_s16  ;;  %s506_s23 = sshll.u32 %s598_s0, 4  ;;  %s507_s23 = int_to_ptr.vmem [resolvable:$false] %s506_s23 }
  0x1b   : > { %s508_s25 = scalar_lea.vmem %s507_s23, 256  ;;  %p509_p10 = scmp.lt.s32.totalorder %s204_s13, %s507_s23 }
  0x1c   : > { %p504_p6 = pnand %p502_p5, %p490_p3  ;;  %p510_p12 = scmp.lt.s32.totalorder %s508_s25, %s501_s16 }
  0x1e   : > { %p505_p7 = pneg %p504_p6  ;;  %p511_p4 = por %p510_p12, %p509_p10 }
  0x20   : > { %p512_p13 = pnand %p511_p4, %p505_p7 }
  0x22   : > { %515 = shalt.err (!%p512_p13)
}
  0x23   : > { %429 = dma.hbm_to_vmem [thread:$0]  (!%p700_p0), %s201_s11, 128, %s204_s13, %s191_s15  }
  0x24   : > { %p215_p11 = pnand %p414_p1, %p214_p2 }
  0x25   : > { %s715_s26 = sand.u32 (!%p215_p11), 1, %s580_s18  }
  0x26   : > { %218 = sbr.rel (%p215_p11) target bundleno = 187 (0xbb), region = 36  ;;  %s415_s27 = sshll.u32 (!%p215_p11), %s715_s26, 3 }
  0x27   : > { %s221_s6 = scalar_lea.sflag (!%p215_p11), [#allocation4], %s715_s26  ;;  %s224_s7 = scalar_lea.vmem (!%p215_p11), [#allocation3], %s415_s27 }
  0x2b   : > { %567 = dma.done.wait (%p676_p8), %s221_s6, 128  }
  0x2c   : > { %569 = vsyncadd (%p676_p8), %s221_s6, 4294967168  ;;  %v599_v0 = vmov 0   ;;  %v269_v1 = vld [vmem:[%s773_s2] sm:$0xff]  ;;  %s263_s10 = sld [smem:[#allocation2]]  ;;  %p260_p11 = scmp.lt.s32.totalorder %s588_s20, 1 }
  0x2d   : > { %485 = vset.pattern.permute.xlu0 %v599_v0  ;;  %v264_v2 = vld [vmem:[%s224_s7] sm:$0xff]  ;;  %s419_s14 = sshll.u32 %s588_s20, 7  ;;  %s255_s15 = scalar_lea.vmem [#allocation6], %s415_s27 }
  0x2e   : > { %272 = vperm.xlu0 %485, %v269_v1   ;;  %486 = vlog2.f32 %v264_v2  ;;  %s261_s11 = scalar_select %p260_p11, %s588_s20, 1 }
  0x2f   : > { %s301_s16 = sshll.u32 %s255_s15, 4  ;;  %s299_s25 = scalar_lea.hbm %s775_s4, %s419_s14  ;;  %s302_s16 = int_to_ptr.vmem [resolvable:$true] %s301_s16 }
  0x30   : > { %s262_s13 = scalar_lea.vmem %s774_s3, %s261_s11  ;;  %s286_s6 = scalar_lea.sflag [#allocation5], %s715_s26 }
  0x31   : > { %v417_v7 = vld [vmem:[%s262_s13] ss:$0 sm:$0xff]  ;;  %s516_s7 = scalar_lea.vmem %s302_s16, 128  ;;  %s600_s8 = smov [#allocation6]  }
  0x32   : > { %v267_v5 = vstv %s263_s10  ;;  %p517_p8 = scmp.ne.s32.totalorder %s302_s16, %s516_s7  ;;  %s520_s9 = sshll.u32 %s600_s8, 4  ;;  %s521_s9 = int_to_ptr.vmem [resolvable:$false] %s520_s9 }
  0x33   : > { %s522_s20 = scalar_lea.vmem %s521_s9, 256  ;;  %p523_p1 = scmp.lt.s32.totalorder %s302_s16, %s521_s9 }
  0x34   : > { %p518_p12 = pnand %p517_p8, %p680_p9  ;;  %p524_p2 = scmp.lt.s32.totalorder %s522_s20, %s516_s7 }
  0x36   : > { %p519_p0 = pneg %p518_p12  ;;  %p525_p3 = por %p524_p2, %p523_p1 }
  0x38   : > { %p526_p5 = pnand %p525_p3, %p519_p0 }
  0x3b   : > { %v487_v3 = vpop.eup %486 }
  0x3c   : > { %v266_v4 = vmul.f32 0.6931472, %v487_v3 }
  0x3e   : > { %v268_v6 = vmul.f32 %v267_v5, %v266_v4 }
  0xa9   : > { %v273_v8 = vpop.permute.xlu0 %272 }
  0xaa   : > { %v275_v9 = vadd.f32 %v273_v8, %v268_v6 }
  0xac   : > { %v283_v10 = vadd.f32 %v417_v7, %v275_v9 }
  0xae   : > { %284 = vst [vmem:[%s255_s15] sm:$0xff] %v283_v10 }
  0xaf   : > { %529 = shalt.err (!%p526_p5)
}
  0xb0   : > { %s530_s27 = scalar_lea.hbm %s299_s25, 128  ;;  %s534_s11 = scalar_lea.hbm %s775_s4, 256 }
  0xb1   : > { %p531_p6 = scmp.ne.s32.totalorder %s299_s25, %s530_s27  ;;  %p535_p4 = scmp.lt.s32.totalorder %s299_s25, %s775_s4 }
  0xb2   : > { %p536_p13 = scmp.lt.s32.totalorder %s534_s11, %s530_s27 }
  0xb3   : > { %p532_p7 = pnand %p531_p6, %p680_p9 }
  0xb4   : > { %p537_p11 = por %p536_p13, %p535_p4 }
  0xb5   : > { %p533_p10 = pneg %p532_p7 }
  0xb7   : > { %p538_p8 = pnand %p537_p11, %p533_p10 }
  0xb9   : > { %541 = shalt.err (!%p538_p8)
}
  0xba   : > { %424 = dma.vmem_to_hbm [thread:$0]  (%p680_p9), %s302_s16, 128, %s299_s25, %s286_s6  }
  0xbb PF: > { %s313_s13 = sand.u32 1, %s576_s17   ;;  %p781_p12 = scmp.ne.s32.totalorder %s779_s5, 0 }
  0xbc   : > { %p782_p0 = scmp.ge.s32.totalorder %s596_s22, 2  ;;  %s314_s14 = scalar_lea.sflag [#allocation5], %s313_s13 }
  0xbe   : > { %p431_p1 = pnand %p782_p0, %p781_p12 }
  0xc0   : > { %p432_p2 = pneg %p431_p1 }
  0xc2   : > { %571 = dma.done.wait (%p432_p2), %s314_s14, 128  }
  0xc3   : > { %573 = vsyncadd (%p432_p2), %s314_s14, 4294967168  ;;  %s21_s22 = sadd.s32 1, %s596_s22   ;;  %s783_s17 = smov %s580_s18 }
  0xc4   : > { %p18_p3 = scmp.ge.s32.totalorder %s21_s22, 4   ;;  %s784_s18 = smov %s584_s19 }
  0xc5   : > { %s785_s19 = smov %s685_s30  ;;  %s786_s20 = smov %s592_s21 }
  0xc6   : > { %s787_s21 = smov %s789_s24  ;;  %20 = sbr.rel (!%p18_p3) target bundleno = 8 (0x8), region = 87 }
  0xcb   :  { %319 = vsyncpa [#allocation4], 1 }
  0xcc   :  { %321 = vsyncpa [#allocation4 + $0x1], 1 }
  0xcd   :  { %322 = vsyncpa [#allocation5], 1 }
  0xce   :  { %324 = vsyncpa [#allocation5 + $0x1], 1 }

</bundles_post_ra>
